<compile_context>
chip_gen: v7x
topology: tpu7x:2x2x1
jax: 0.10.0
libtpu: 0.0.40
codegen_flags: <defaults>
</compile_context>

<pallas_src>
import functools

import jax
import jax.numpy as jnp
from jax.experimental import pallas as pl
from jax.experimental.pallas import tpu as pltpu

MARGIN = 0.05
NORM_EPS = 1e-12  # F.normalize eps (applied to the norm)


def _round_up(x, m):
    return ((x + m - 1) // m) * m


def _choose_tm(n):
    # Largest multiple of 8 (<=128) that minimizes per-half row padding.
    best_tm, best_pad = 8, _round_up(n, 8) - n
    for t in range(8, 129, 8):
        pad = _round_up(n, t) - n
        if pad < best_pad or (pad == best_pad and t > best_tm):
            best_tm, best_pad = t, pad
    return best_tm


def _footprint_bytes(tm, tn, dp):
    # rough per-core VMEM footprint of the fused kernel (f32 everywhere)
    elems = (2 * 2 * tm * dp   # anchor + positive tiles, double-buffered
             + 2 * tn * dp     # column tile, double-buffered
             + tm * dp         # normalized-anchor scratch
             + 3 * tm          # ap / tot / cnt scratch
             + 2 * 2 * tm      # two (tm, 1) outputs, double-buffered
             + 8 * tm * tn)    # live (tm, tn) elementwise temporaries
    return elems * 4


def _choose_tn(mp, tm, dp):
    # Largest divisor of mp that is a multiple of 8, <= 512, and keeps the
    # VMEM footprint modest (bounded intermediates, pipelined column DMA).
    cands = [t for t in range(8, min(512, mp) + 1, 8) if mp % t == 0]
    for t in sorted(cands, reverse=True):
        if _footprint_bytes(tm, t, dp) <= 20 * 1024 * 1024:
            return t
    return cands[0]


def _vmem_limit_bytes(tm, tn, dp):
    fp = _footprint_bytes(tm, tn, dp)
    return int(min(max(2 * fp, 32 * 1024 * 1024), 64 * 1024 * 1024))


def _triplet_kernel(xa_ref, xp_ref, xc_ref, tot_out, cnt_out,
                    xa_n, ap_s, tot_s, cnt_s, *,
                    np_half, n_valid, tm, tn, margin, gram_dtype):
    # xa_ref: (TM, Dp) raw anchor tile          (block index depends only on i -> resident over k)
    # xp_ref: (TM, Dp) raw positive tile        (row-aligned via index_map, resident over k)
    # xc_ref: (TN, Dp) raw column (negative) tile, streamed over k
    i = pl.program_id(0)
    k = pl.program_id(1)
    nk = pl.num_programs(1)
    eps2 = NORM_EPS * NORM_EPS

    @pl.when(k == 0)
    def _init():
        # normalize anchor / positive tiles once per anchor tile (rsqrt-multiply: EUP slot)
        xa = xa_ref[...].astype(jnp.float32)
        xp = xp_ref[...].astype(jnp.float32)
        inv_a = jax.lax.rsqrt(jnp.maximum(jnp.sum(xa * xa, -1, keepdims=True), eps2))
        inv_p = jax.lax.rsqrt(jnp.maximum(jnp.sum(xp * xp, -1, keepdims=True), eps2))
        xan = xa * inv_a
        xa_n[...] = xan
        # anchor-positive distance via the unit-norm identity: d = sqrt(2 - 2 a.p)
        ap_dot = jnp.sum(xan * (xp * inv_p), -1, keepdims=True)           # (TM, 1)
        ap_s[...] = jnp.sqrt(jnp.maximum(2.0 - 2.0 * ap_dot, 0.0))
        tot_s[...] = jnp.zeros_like(tot_s)
        cnt_s[...] = jnp.zeros_like(cnt_s)

    # normalize the streamed column tile as it arrives
    xc = xc_ref[...].astype(jnp.float32)
    inv_c = jax.lax.rsqrt(jnp.maximum(jnp.sum(xc * xc, -1, keepdims=True), eps2))
    xc_n = xc * inv_c

    # anchor-negative distances: Gram on the MXU, contracting last dims (no explicit transpose)
    gram = jax.lax.dot_general(
        xa_n[...].astype(gram_dtype), xc_n.astype(gram_dtype),
        dimension_numbers=(((1,), (1,)), ((), ())),
        preferred_element_type=jnp.float32)                               # (TM, TN)
    dist = jnp.sqrt(jnp.maximum(2.0 - 2.0 * gram, 0.0))
    hinge = jnp.maximum(ap_s[...] - dist + margin, 0.0)

    # negative mask without integer modulo: label(c) == label(r) iff c == r or c == pos_col(r)
    row = i * tm + jax.lax.broadcasted_iota(jnp.int32, (tm, 1), 0)
    col = k * tn + jax.lax.broadcasted_iota(jnp.int32, (tm, tn), 1)
    pos_col = jnp.where(row < np_half, row + np_half, row - np_half)
    neg = jnp.logical_and(col != row, col != pos_col)
    if np_half > n_valid:  # static: zero-padded rows inside each half are invalid columns
        col_loc = jnp.where(col < np_half, col, col - np_half)
        neg = jnp.logical_and(neg, col_loc < n_valid)
    losses = jnp.where(neg, hinge, 0.0)

    # per-anchor partial reductions accumulated in VMEM scratch
    tot_s[...] += jnp.sum(losses, -1, keepdims=True)
    cnt_s[...] += jnp.sum((losses > 0.0).astype(jnp.float32), -1, keepdims=True)

    @pl.when(k == nk - 1)
    def _finalize():
        tot_out[...] = tot_s[...]
        cnt_out[...] = cnt_s[...]


def triplet_loss(feats1, feats2, *, margin=MARGIN, gram_dtype=jnp.float32):
    """feats1, feats2: (N, D). Returns {'T': scalar loss}."""
    n, d = feats1.shape
    assert feats2.shape == (n, d)

    dp = _round_up(d, 128)            # lane-dense feature dim / aligned MXU K
    tm = _choose_tm(n)                # anchor tile (multiple of 8, minimal per-half padding)
    np_half = _round_up(n, tm)        # padded half size (multiple of tm)
    mp = 2 * np_half                  # total padded rows; mp // tm is even and >= 2 (megacore)
    tn = _choose_tn(mp, tm, dp)       # column tile (divides mp, bounded VMEM)
    half_tiles = np_half // tm
    total_tiles = mp // tm
    grid = (total_tiles, mp // tn)

    # layout plumbing only: one concat (+ one lane pad when needed)
    if np_half == n:
        emb = jnp.concatenate([feats1, feats2], axis=0)
        if dp > d:
            emb = jnp.pad(emb, ((0, 0), (0, dp - d)))
    else:
        pad_rows = np_half - n
        f1 = jnp.pad(feats1, ((0, pad_rows), (0, dp - d)))
        f2 = jnp.pad(feats2, ((0, pad_rows), (0, dp - d)))
        emb = jnp.concatenate([f1, f2], axis=0)

    kernel = functools.partial(
        _triplet_kernel, np_half=np_half, n_valid=n, tm=tm, tn=tn,
        margin=float(margin), gram_dtype=gram_dtype)

    row_tot, row_cnt = pl.pallas_call(
        kernel,
        out_shape=(jax.ShapeDtypeStruct((mp, 1), jnp.float32),
                   jax.ShapeDtypeStruct((mp, 1), jnp.float32)),
        grid=grid,
        in_specs=[
            # anchor tile: depends only on i -> stays resident across the k loop
            pl.BlockSpec((tm, dp), lambda i, k: (i, 0)),
            # positive tile: positive of row r is (r + N) % 2N -> pure index_map, no xn_pos copy
            pl.BlockSpec((tm, dp), lambda i, k: ((i + half_tiles) % total_tiles, 0)),
            # column (negative) tile: streamed / pipelined over k
            pl.BlockSpec((tn, dp), lambda i, k: (k, 0)),
        ],
        out_specs=(pl.BlockSpec((tm, 1), lambda i, k: (i, 0)),
                   pl.BlockSpec((tm, 1), lambda i, k: (i, 0))),
        scratch_shapes=[pltpu.VMEM((tm, dp), jnp.float32),   # normalized anchors
                        pltpu.VMEM((tm, 1), jnp.float32),    # anchor-positive distance
                        pltpu.VMEM((tm, 1), jnp.float32),    # per-row loss-sum accumulator
                        pltpu.VMEM((tm, 1), jnp.float32)],   # per-row nonzero-count accumulator
        compiler_params=pltpu.CompilerParams(
            dimension_semantics=("parallel", "arbitrary"),
            vmem_limit_bytes=_vmem_limit_bytes(tm, tn, dp)),
    )(emb, emb, emb)

    # AvgNonZeroReducer: mean over strictly-positive losses, 0 if none.
    # Padded anchor rows (if any) sit at [n:np_half) and [np_half+n:mp) and are simply excluded.
    if np_half == n:
        total = jnp.sum(row_tot)
        count = jnp.sum(row_cnt)
    else:
        total = jnp.sum(row_tot[:n]) + jnp.sum(row_tot[np_half:np_half + n])
        count = jnp.sum(row_cnt[:n]) + jnp.sum(row_cnt[np_half:np_half + n])
    loss = jnp.where(count > 0.0, total / jnp.maximum(count, 1.0), 0.0)
    return {"T": loss}


if __name__ == "__main__":
    key = jax.random.PRNGKey(0)
    k1, k2 = jax.random.split(key)
    N, D = 8, 32
    feats1 = jax.random.normal(k1, (N, D), dtype=jnp.float32)
    feats2 = jax.random.normal(k2, (N, D), dtype=jnp.float32)

    result = triplet_loss(feats1, feats2)
    jax.block_until_ready(result["T"])

    # pure-JAX reference check (same math as pytorch-metric-learning defaults)
    emb = jnp.concatenate([feats1, feats2], axis=0)
    xn = emb / jnp.maximum(jnp.linalg.norm(emb, axis=-1, keepdims=True), NORM_EPS)
    sq = jnp.sum(xn * xn, -1)
    dist = jnp.sqrt(jnp.maximum(sq[:, None] + sq[None, :] - 2 * xn @ xn.T, 0.0))
    M = 2 * N
    row = jnp.arange(M)[:, None]
    col = jnp.arange(M)[None, :]
    same = (row % N) == (col % N)
    pos_mask = same & (row != col)
    neg_mask = ~same
    ap = jnp.sum(jnp.where(pos_mask, dist, 0.0), -1, keepdims=True)
    losses = jnp.where(neg_mask, jnp.maximum(ap - dist + MARGIN, 0.0), 0.0)
    cnt = jnp.sum(losses > 0)
    ref = jnp.where(cnt > 0, jnp.sum(losses) / jnp.maximum(cnt, 1), 0.0)

    assert jnp.allclose(result["T"], ref, atol=1e-4, rtol=1e-4), (result["T"], ref)
    print("KERNEL_OK")
</pallas_src>

<mosaic_0001>
module attributes {stable_mosaic.version = 11 : i64} {
  func.func @_triplet_kernel(%arg0: i32, %arg1: i32, %arg2: memref<8x128xf32, #tpu.memory_space<vmem>>, %arg3: memref<8x128xf32, #tpu.memory_space<vmem>>, %arg4: memref<16x128xf32, #tpu.memory_space<vmem>>, %arg5: memref<8x1xf32, #tpu.memory_space<vmem>>, %arg6: memref<8x1xf32, #tpu.memory_space<vmem>>, %arg7: memref<8x128xf32, #tpu.memory_space<vmem>>, %arg8: memref<8x1xf32, #tpu.memory_space<vmem>>, %arg9: memref<8x1xf32, #tpu.memory_space<vmem>>, %arg10: memref<8x1xf32, #tpu.memory_space<vmem>>) attributes {dimension_semantics = [#tpu.dimension_semantics<parallel>, #tpu.dimension_semantics<arbitrary>], iteration_bounds = array<i64: 2, 1>, scalar_prefetch = 0 : i64, scratch_operands = 4 : i64, tpu.core_type = #tpu.core_type<tc>, window_params = [{transform_indices = @transform_0, window_bounds = array<i64: 8, 128>}, {transform_indices = @transform_1, window_bounds = array<i64: 8, 128>}, {transform_indices = @transform_2, window_bounds = array<i64: 16, 128>}, {transform_indices = @transform_3, window_bounds = array<i64: 8, 1>}, {transform_indices = @transform_4, window_bounds = array<i64: 8, 1>}]} {
    %c0_i32 = arith.constant 0 : i32
    %0 = arith.cmpi eq, %arg1, %c0_i32 : i32
    %1 = arith.extui %0 : i1 to i32
    %c0_i32_0 = arith.constant 0 : i32
    %2 = arith.cmpi ne, %1, %c0_i32_0 : i32
    scf.if %2 {
      %c0_30 = arith.constant 0 : index
      %c0_31 = arith.constant 0 : index
      %67 = vector.load %arg2[%c0_30, %c0_31] : memref<8x128xf32, #tpu.memory_space<vmem>>, vector<8x128xf32>
      %c0_32 = arith.constant 0 : index
      %c0_33 = arith.constant 0 : index
      %68 = vector.load %arg3[%c0_32, %c0_33] : memref<8x128xf32, #tpu.memory_space<vmem>>, vector<8x128xf32>
      %69 = arith.mulf %67, %67 : vector<8x128xf32>
      %cst_34 = arith.constant dense<0.000000e+00> : vector<8xf32>
      %70 = vector.multi_reduction <add>, %69, %cst_34 [1] : vector<8x128xf32> to vector<8xf32>
      %71 = vector.shape_cast %70 : vector<8xf32> to vector<8x1xf32>
      %cst_35 = arith.constant 1.000000e-24 : f32
      %72 = vector.broadcast %cst_35 : f32 to vector<8x1xf32>
      %73 = arith.maximumf %71, %72 : vector<8x1xf32>
      %74 = math.rsqrt %73 : vector<8x1xf32>
      %75 = arith.mulf %68, %68 : vector<8x128xf32>
      %cst_36 = arith.constant dense<0.000000e+00> : vector<8xf32>
      %76 = vector.multi_reduction <add>, %75, %cst_36 [1] : vector<8x128xf32> to vector<8xf32>
      %77 = vector.shape_cast %76 : vector<8xf32> to vector<8x1xf32>
      %cst_37 = arith.constant 1.000000e-24 : f32
      %78 = vector.broadcast %cst_37 : f32 to vector<8x1xf32>
      %79 = arith.maximumf %77, %78 : vector<8x1xf32>
      %80 = math.rsqrt %79 : vector<8x1xf32>
      %81 = vector.broadcast %74 : vector<8x1xf32> to vector<8x128xf32>
      %82 = arith.mulf %67, %81 : vector<8x128xf32>
      %c0_38 = arith.constant 0 : index
      %c0_39 = arith.constant 0 : index
      %83 = vector.load %arg7[%c0_38, %c0_39] : memref<8x128xf32, #tpu.memory_space<vmem>>, vector<8x128xf32>
      tpu.vector_store %arg7[%c0_38, %c0_39], %82 {strides = array<i32>} : memref<8x128xf32, #tpu.memory_space<vmem>>, vector<8x128xf32>,
      %84 = vector.broadcast %80 : vector<8x1xf32> to vector<8x128xf32>
      %85 = arith.mulf %68, %84 : vector<8x128xf32>
      %86 = arith.mulf %82, %85 : vector<8x128xf32>
      %cst_40 = arith.constant dense<0.000000e+00> : vector<8xf32>
      %87 = vector.multi_reduction <add>, %86, %cst_40 [1] : vector<8x128xf32> to vector<8xf32>
      %88 = vector.shape_cast %87 : vector<8xf32> to vector<8x1xf32>
      %cst_41 = arith.constant 2.000000e+00 : f32
      %89 = vector.broadcast %cst_41 : f32 to vector<8x1xf32>
      %90 = arith.mulf %89, %88 : vector<8x1xf32>
      %cst_42 = arith.constant 2.000000e+00 : f32
      %91 = vector.broadcast %cst_42 : f32 to vector<8x1xf32>
      %92 = arith.subf %91, %90 : vector<8x1xf32>
      %cst_43 = arith.constant 0.000000e+00 : f32
      %93 = vector.broadcast %cst_43 : f32 to vector<8x1xf32>
      %94 = arith.maximumf %92, %93 : vector<8x1xf32>
      %95 = math.sqrt %94 : vector<8x1xf32>
      %c0_44 = arith.constant 0 : index
      %c0_45 = arith.constant 0 : index
      %96 = vector.load %arg8[%c0_44, %c0_45] : memref<8x1xf32, #tpu.memory_space<vmem>>, vector<8x1xf32>
      tpu.vector_store %arg8[%c0_44, %c0_45], %95 {strides = array<i32>} : memref<8x1xf32, #tpu.memory_space<vmem>>, vector<8x1xf32>,
      %cst_46 = arith.constant 0.000000e+00 : f32
      %97 = vector.broadcast %cst_46 : f32 to vector<8x1xf32>
      %c0_47 = arith.constant 0 : index
      %c0_48 = arith.constant 0 : index
      %98 = vector.load %arg9[%c0_47, %c0_48] : memref<8x1xf32, #tpu.memory_space<vmem>>, vector<8x1xf32>
      tpu.vector_store %arg9[%c0_47, %c0_48], %97 {strides = array<i32>} : memref<8x1xf32, #tpu.memory_space<vmem>>, vector<8x1xf32>,
      %cst_49 = arith.constant 0.000000e+00 : f32
      %99 = vector.broadcast %cst_49 : f32 to vector<8x1xf32>
      %c0_50 = arith.constant 0 : index
      %c0_51 = arith.constant 0 : index
      %100 = vector.load %arg10[%c0_50, %c0_51] : memref<8x1xf32, #tpu.memory_space<vmem>>, vector<8x1xf32>
      tpu.vector_store %arg10[%c0_50, %c0_51], %99 {strides = array<i32>} : memref<8x1xf32, #tpu.memory_space<vmem>>, vector<8x1xf32>,
    } else {
    }
    %c0 = arith.constant 0 : index
    %c0_1 = arith.constant 0 : index
    %3 = vector.load %arg4[%c0, %c0_1] : memref<16x128xf32, #tpu.memory_space<vmem>>, vector<16x128xf32>
    %4 = arith.mulf %3, %3 : vector<16x128xf32>
    %cst = arith.constant dense<0.000000e+00> : vector<16xf32>
    %5 = vector.multi_reduction <add>, %4, %cst [1] : vector<16x128xf32> to vector<16xf32>
    %6 = vector.shape_cast %5 : vector<16xf32> to vector<16x1xf32>
    %cst_2 = arith.constant 1.000000e-24 : f32
    %7 = vector.broadcast %cst_2 : f32 to vector<16x1xf32>
    %8 = arith.maximumf %6, %7 : vector<16x1xf32>
    %9 = math.rsqrt %8 : vector<16x1xf32>
    %10 = vector.broadcast %9 : vector<16x1xf32> to vector<16x128xf32>
    %11 = arith.mulf %3, %10 : vector<16x128xf32>
    %c0_3 = arith.constant 0 : index
    %c0_4 = arith.constant 0 : index
    %12 = vector.load %arg7[%c0_3, %c0_4] : memref<8x128xf32, #tpu.memory_space<vmem>>, vector<8x128xf32>
    %cst_5 = arith.constant dense<0.000000e+00> : vector<8x16xf32>
    %13 = tpu.matmul %12, %11, %cst_5 {dimension_numbers = #tpu.dot_dimension_numbers<[1], [1], [0], [0], [0, 0, 1, 0], [], []>} : vector<8x128xf32>, vector<16x128xf32>, vector<8x16xf32> -> vector<8x16xf32>
    %cst_6 = arith.constant 2.000000e+00 : f32
    %14 = vector.broadcast %cst_6 : f32 to vector<8x16xf32>
    %15 = arith.mulf %14, %13 : vector<8x16xf32>
    %cst_7 = arith.constant 2.000000e+00 : f32
    %16 = vector.broadcast %cst_7 : f32 to vector<8x16xf32>
    %17 = arith.subf %16, %15 : vector<8x16xf32>
    %cst_8 = arith.constant 0.000000e+00 : f32
    %18 = vector.broadcast %cst_8 : f32 to vector<8x16xf32>
    %19 = arith.maximumf %17, %18 : vector<8x16xf32>
    %20 = math.sqrt %19 : vector<8x16xf32>
    %c0_9 = arith.constant 0 : index
    %c0_10 = arith.constant 0 : index
    %21 = vector.load %arg8[%c0_9, %c0_10] : memref<8x1xf32, #tpu.memory_space<vmem>>, vector<8x1xf32>
    %22 = vector.broadcast %21 : vector<8x1xf32> to vector<8x16xf32>
    %23 = arith.subf %22, %20 : vector<8x16xf32>
    %cst_11 = arith.constant 5.000000e-02 : f32
    %24 = vector.broadcast %cst_11 : f32 to vector<8x16xf32>
    %25 = arith.addf %23, %24 : vector<8x16xf32>
    %cst_12 = arith.constant 0.000000e+00 : f32
    %26 = vector.broadcast %cst_12 : f32 to vector<8x16xf32>
    %27 = arith.maximumf %25, %26 : vector<8x16xf32>
    %c8_i32 = arith.constant 8 : i32
    %28 = arith.muli %arg0, %c8_i32 : i32
    %29 = tpu.iota {dimensions = array<i32: 0>} : vector<8x1xi32>
    %30 = vector.broadcast %28 : i32 to vector<8x1xi32>
    %31 = arith.addi %30, %29 : vector<8x1xi32>
    %c16_i32 = arith.constant 16 : i32
    %32 = arith.muli %arg1, %c16_i32 : i32
    %33 = tpu.iota {dimensions = array<i32: 1>} : vector<8x16xi32>
    %34 = vector.broadcast %32 : i32 to vector<8x16xi32>
    %35 = arith.addi %34, %33 : vector<8x16xi32>
    %c8_i32_13 = arith.constant 8 : i32
    %36 = vector.broadcast %c8_i32_13 : i32 to vector<8x1xi32>
    %37 = arith.cmpi slt, %31, %36 : vector<8x1xi32>
    %c8_i32_14 = arith.constant 8 : i32
    %38 = vector.broadcast %c8_i32_14 : i32 to vector<8x1xi32>
    %39 = arith.addi %31, %38 : vector<8x1xi32>
    %c8_i32_15 = arith.constant 8 : i32
    %40 = vector.broadcast %c8_i32_15 : i32 to vector<8x1xi32>
    %41 = arith.subi %31, %40 : vector<8x1xi32>
    %42 = arith.select %37, %39, %41 : vector<8x1xi1>, vector<8x1xi32>
    %43 = vector.broadcast %31 : vector<8x1xi32> to vector<8x16xi32>
    %44 = arith.cmpi ne, %35, %43 : vector<8x16xi32>
    %45 = vector.broadcast %42 : vector<8x1xi32> to vector<8x16xi32>
    %46 = arith.cmpi ne, %35, %45 : vector<8x16xi32>
    %47 = arith.andi %44, %46 : vector<8x16xi1>
    %cst_16 = arith.constant 0.000000e+00 : f32
    %48 = vector.broadcast %cst_16 : f32 to vector<8x16xf32>
    %49 = arith.select %47, %27, %48 : vector<8x16xi1>, vector<8x16xf32>
    %c0_17 = arith.constant 0 : index
    %c0_18 = arith.constant 0 : index
    %50 = vector.load %arg9[%c0_17, %c0_18] : memref<8x1xf32, #tpu.memory_space<vmem>>, vector<8x1xf32>
    %cst_19 = arith.constant dense<0.000000e+00> : vector<8xf32>
    %51 = vector.multi_reduction <add>, %49, %cst_19 [1] : vector<8x16xf32> to vector<8xf32>
    %52 = vector.shape_cast %51 : vector<8xf32> to vector<8x1xf32>
    %53 = arith.addf %50, %52 : vector<8x1xf32>
    %c0_20 = arith.constant 0 : index
    %c0_21 = arith.constant 0 : index
    %54 = vector.load %arg9[%c0_20, %c0_21] : memref<8x1xf32, #tpu.memory_space<vmem>>, vector<8x1xf32>
    tpu.vector_store %arg9[%c0_20, %c0_21], %53 {strides = array<i32>} : memref<8x1xf32, #tpu.memory_space<vmem>>, vector<8x1xf32>,
    %c0_22 = arith.constant 0 : index
    %c0_23 = arith.constant 0 : index
    %55 = vector.load %arg10[%c0_22, %c0_23] : memref<8x1xf32, #tpu.memory_space<vmem>>, vector<8x1xf32>
    %cst_24 = arith.constant 0.000000e+00 : f32
    %56 = vector.broadcast %cst_24 : f32 to vector<8x16xf32>
    %57 = arith.cmpf ogt, %49, %56 : vector<8x16xf32>
    %58 = arith.extui %57 : vector<8x16xi1> to vector<8x16xi32>
    %59 = arith.sitofp %58 : vector<8x16xi32> to vector<8x16xf32>
    %cst_25 = arith.constant dense<0.000000e+00> : vector<8xf32>
    %60 = vector.multi_reduction <add>, %59, %cst_25 [1] : vector<8x16xf32> to vector<8xf32>
    %61 = vector.shape_cast %60 : vector<8xf32> to vector<8x1xf32>
    %62 = arith.addf %55, %61 : vector<8x1xf32>
    %c0_26 = arith.constant 0 : index
    %c0_27 = arith.constant 0 : index
    %63 = vector.load %arg10[%c0_26, %c0_27] : memref<8x1xf32, #tpu.memory_space<vmem>>, vector<8x1xf32>
    tpu.vector_store %arg10[%c0_26, %c0_27], %62 {strides = array<i32>} : memref<8x1xf32, #tpu.memory_space<vmem>>, vector<8x1xf32>,
    %c0_i32_28 = arith.constant 0 : i32
    %64 = arith.cmpi eq, %arg1, %c0_i32_28 : i32
    %65 = arith.extui %64 : i1 to i32
    %c0_i32_29 = arith.constant 0 : i32
    %66 = arith.cmpi ne, %65, %c0_i32_29 : i32
    scf.if %66 {
      %c0_30 = arith.constant 0 : index
      %c0_31 = arith.constant 0 : index
      %67 = vector.load %arg9[%c0_30, %c0_31] : memref<8x1xf32, #tpu.memory_space<vmem>>, vector<8x1xf32>
      %c0_32 = arith.constant 0 : index
      %c0_33 = arith.constant 0 : index
      %68 = vector.load %arg5[%c0_32, %c0_33] : memref<8x1xf32, #tpu.memory_space<vmem>>, vector<8x1xf32>
      tpu.vector_store %arg5[%c0_32, %c0_33], %67 {strides = array<i32>} : memref<8x1xf32, #tpu.memory_space<vmem>>, vector<8x1xf32>,
      %c0_34 = arith.constant 0 : index
      %c0_35 = arith.constant 0 : index
      %69 = vector.load %arg10[%c0_34, %c0_35] : memref<8x1xf32, #tpu.memory_space<vmem>>, vector<8x1xf32>
      %c0_36 = arith.constant 0 : index
      %c0_37 = arith.constant 0 : index
      %70 = vector.load %arg6[%c0_36, %c0_37] : memref<8x1xf32, #tpu.memory_space<vmem>>, vector<8x1xf32>
      tpu.vector_store %arg6[%c0_36, %c0_37], %69 {strides = array<i32>} : memref<8x1xf32, #tpu.memory_space<vmem>>, vector<8x1xf32>,
    } else {
    }
    return
  }
  func.func @transform_0(%arg0: i32, %arg1: i32) -> (i32, i32) {
    %c0_i32 = arith.constant 0 : i32
    %c0_i32_0 = arith.constant 0 : i32
    return %arg0, %c0_i32 : i32, i32
  }
  func.func @transform_1(%arg0: i32, %arg1: i32) -> (i32, i32) {
    %c1_i32 = arith.constant 1 : i32
    %0 = arith.addi %arg0, %c1_i32 : i32
    %c2_i32 = arith.constant 2 : i32
    %c0_i32 = arith.constant 0 : i32
    %1 = arith.cmpi eq, %c2_i32, %c0_i32 : i32
    %c1_i32_0 = arith.constant 1 : i32
    %2 = arith.select %1, %c1_i32_0, %c2_i32 : i32
    %3 = arith.remsi %0, %2 : i32
    %c0_i32_1 = arith.constant 0 : i32
    %4 = arith.cmpi ne, %3, %c0_i32_1 : i32
    %c0_i32_2 = arith.constant 0 : i32
    %5 = arith.cmpi slt, %3, %c0_i32_2 : i32
    %c0_i32_3 = arith.constant 0 : i32
    %6 = arith.cmpi slt, %2, %c0_i32_3 : i32
    %7 = arith.xori %5, %6 : i1
    %8 = arith.andi %7, %4 : i1
    %9 = arith.addi %3, %2 : i32
    %10 = arith.select %8, %9, %3 : i32
    %c0_i32_4 = arith.constant 0 : i32
    %c0_i32_5 = arith.constant 0 : i32
    return %10, %c0_i32_4 : i32, i32
  }
  func.func @transform_2(%arg0: i32, %arg1: i32) -> (i32, i32) {
    %c0_i32 = arith.constant 0 : i32
    %c0_i32_0 = arith.constant 0 : i32
    return %arg1, %c0_i32 : i32, i32
  }
  func.func @transform_3(%arg0: i32, %arg1: i32) -> (i32, i32) {
    %c0_i32 = arith.constant 0 : i32
    %c0_i32_0 = arith.constant 0 : i32
    return %arg0, %c0_i32 : i32, i32
  }
  func.func @transform_4(%arg0: i32, %arg1: i32) -> (i32, i32) {
    %c0_i32 = arith.constant 0 : i32
    %c0_i32_0 = arith.constant 0 : i32
    return %arg0, %c0_i32 : i32, i32
  }
}

</mosaic_0001>

<bundles_post_ra>
// kernel: tpu_custom_call.1
= control target key start
LH: loop header
LB: loop body
LE: loop exit
PB: predicated region body
PF: predicated region fallthrough
CT: control target
= control target key end

     0   :  { %s1312_s0 = inlined_call_operand.hbm [shape: f32[16,128], index: 0, kind: input, shape index: {}]   ;;  %s1313_s1 = inlined_call_operand.hbm [shape: f32[16,128], index: 1, kind: input, shape index: {}]   ;;  %s1314_s2 = inlined_call_operand.hbm [shape: f32[16,128], index: 2, kind: input, shape index: {}]   ;;  %s1315_s3 = inlined_call_operand.vmem [shape: f32[16,1], index: 3, kind: output, shape index: {0}]   ;;  %s1316_s4 = inlined_call_operand.vmem [shape: f32[16,1], index: 4, kind: output, shape index: {1}]  }
   0x1   :  { %1325 = sst [smem:[#allocation14_spill]] %s1314_s2 }
   0x2   :  { %1326 = sst [smem:[#allocation15_spill]] %s1316_s4 }
   0x3   :  { %10 = vsyncpa [#allocation7], 0 }
   0x4   :  { %12 = vsyncpa [#allocation7 + $0x1], 0 }
   0x5   :  { %13 = vsyncpa [#allocation9], 0 }
   0x6   :  { %15 = vsyncpa [#allocation9 + $0x1], 0  ;;  %s1031_s15 = smov 0   ;;  %s1033_s16 = smov 0  }
   0x7   :  { %s1035_s17 = smov 0   ;;  %s1037_s18 = smov 0  }
   0x8   :  { %s1039_s19 = smov 0   ;;  %s1041_s20 = smov 0  }
   0x9   :  { %s1043_s21 = smov 0   ;;  %s1045_s22 = smov 0  }
   0xa   :  { %s1047_s23 = smov 0  }
   0xb LB: > { %s1321_s24 = sadd.s32 4294967295, %s995_s23   ;;  %p676_p0 = scmp.ge.s32.totalorder %s995_s23, 1  ;;  %s995_s23 = sphi %s1047_s23, %s21_s23   ;;  %s991_s22 = sphi %s1045_s22, %s1351_s22   ;;  %s987_s21 = sphi %s1043_s21, %s1350_s21   ;;  %s983_s20 = sphi %s1041_s20, %s1349_s20   ;;  %s979_s19 = sphi %s1039_s19, %s1348_s19   ;;  %s975_s18 = sphi %s1037_s18, %s1347_s18   ;;  %s971_s17 = sphi %s1035_s17, %s1346_s17   ;;  %s967_s16 = sphi %s1033_s16, %s1345_s16   ;;  %s963_s15 = sphi %s1031_s15, %s1344_s15  }
   0xc   : > { %p1080_p1 = scmp.eq.s32.totalorder %s1321_s24, 0  ;;  %p194_p2 = scmp.lt.s32.totalorder %s995_s23, 3 }
   0xd   : > { %s997_s27 = smov [#allocation10]   ;;  %s1330_s2 = sld [smem:[#allocation14_spill]] }
   0xe   : > { %s1327_s25 = scalar_select %p1080_p1, 1, 0 }
   0xf   : > { %p1085_p3 = pnand %p676_p0, %p194_p2  ;;  %s209_s28 = sshll.u32 %s997_s27, 4  ;;  %s210_s28 = int_to_ptr.vmem [resolvable:$true] %s209_s28 }
  0x11   : > { %s1328_s26 = scalar_select %p1085_p3, 1, 0 }
  0x12   : > { %p718_p4 = pneg %p1085_p3 }
  0x13   : > { %s825_s6 = scalar_lea.hbm %s1330_s2, 256 }
  0x14   : > { %p1093_p5 = pnand %p718_p4, %p1080_p1  ;;  %p826_p6 = scmp.ne.s32.totalorder %s1330_s2, %s825_s6 }
  0x15   : > { %p832_p10 = scmp.lt.u32.totalorder %s825_s6, %s1330_s2 }
  0x16   : > { %p827_p7 = pneg %p1093_p5 }
  0x18   : > { %p828_p8 = pnand %p827_p7, %p826_p6 }
  0x1a   : > { %p829_p9 = pneg %p828_p8 }
  0x1c   : > { %p834_p11 = pnand %p832_p10, %p829_p9 }
  0x1e   : > { %837 = shalt.err (!%p834_p11)
}
  0x1f   : > { %s838_s11 = scalar_lea.vmem %s210_s28, 256  ;;  %p846_p2 = scmp.lt.s32.totalorder %s210_s28, %s210_s28 }
  0x20   : > { %p839_p12 = scmp.ne.s32.totalorder %s210_s28, %s838_s11  ;;  %p847_p4 = scmp.lt.s32.totalorder %s838_s11, %s838_s11 }
  0x22   : > { %p841_p13 = pnand %p839_p12, %p827_p7  ;;  %p848_p3 = por %p847_p4, %p846_p2 }
  0x24   : > { %p842_p0 = pneg %p841_p13 }
  0x26   : > { %p849_p1 = pnand %p848_p3, %p842_p0 }
  0x28   : > { %852 = shalt.err (!%p849_p1)
}
  0x29   : > { %s998_s12 = smov 128   ;;  %s999_s13 = smov 8  }
  0x2a   : > { %721 = dma.hbm_to_vmem [thread:$0]  (!%p1093_p5), %s1330_s2, 256, %s210_s28, [#allocation9], %s998_s12, %s998_s12, %s999_s13  }
  0x2b   : > { %s33_s30 = sadd.s32 1, %s991_s22  ;;  %s40_s5 = sadd.s32 1, %s983_s20 }
  0x2c   : > { %p35_p1 = scmp.ge.s32.totalorder %s33_s30, 2  ;;  %p47_p3 = scmp.ne.s32.totalorder %s983_s20, %s979_s19 }
  0x2d   : > { %p1323_p6 = scmp.eq.s32.totalorder %s995_s23, 0  ;;  %p53_p8 = scmp.ne.s32.totalorder %s979_s19, %s975_s18 }
  0x2e   : > { %s1118_s6 = scalar_select %p35_p1, 0, %s33_s30  }
  0x2f   : > { %p1122_p7 = por %p1323_p6, %p47_p3  ;;  %p1332_p9 = scmp.ne.s32.totalorder %s1327_s25, 0 }
  0x30   : > { %s37_s29 = ssub.s32 %s991_s22, %s1118_s6  ;;  %s65_s8 = ssub.s32 0, %s33_s30 }
  0x31   : > { %p38_p5 = scmp.eq.s32.totalorder %s37_s29, 0  ;;  %p1132_p10 = por %p1332_p9, %p53_p8 }
  0x32   : > { %s76_s9 = sadd.s32 1, %s1118_s6  ;;  %s1140_s11 = smin.u32 %s65_s8, %s33_s30 }
  0x33   : > { %s1333_s28 = scalar_select %p1132_p10, 1, 0 }
  0x34   : > { %s1138_s10 = scalar_select %p38_p5, %s983_s20, %s40_s5  }
  0x35   : > { %s78_s12 = ssub.s32 0, %s76_s9  ;;  %p1322_p11 = scmp.lt.s32.totalorder %s995_s23, 2 }
  0x36   : > { %s673_s13 = smin.u32 %s78_s12, %s76_s9  ;;  %s223_s14 = sand.u32 1, %s983_s20  }
  0x37   : > { %s1144_s18 = sand.u32 1, %s673_s13   ;;  %s679_s27 = sshll.u32 %s223_s14, 3 }
  0x38   : > { %s680_s29 = sshll.u32 %s991_s22, 7  ;;  %s227_s5 = scalar_lea.vmem [#allocation6], %s679_s27 }
  0x39   : > { %s1150_s4 = scalar_lea.hbm %s1312_s0, %s680_s29  ;;  %s234_s30 = sshll.u32 %s227_s5, 4  ;;  %s1152_s30 = int_to_ptr.vmem [resolvable:$true] %s234_s30 }
  0x3a   : > { %p1158_p12 = pnand %p1322_p11, %p1122_p7  ;;  %s224_s9 = scalar_lea.sflag [#allocation7], %s223_s14 }
  0x3b   : > { %s853_s2 = scalar_lea.hbm %s1150_s4, 128  ;;  %s858_s7 = scalar_lea.hbm %s1312_s0, 256 }
  0x3c   : > { %p854_p13 = scmp.ne.s32.totalorder %s1150_s4, %s853_s2  ;;  %p855_p0 = pneg %p1158_p12 }
  0x3d   : > { %p859_p1 = scmp.lt.u32.totalorder %s1150_s4, %s1312_s0  ;;  %p860_p3 = scmp.lt.u32.totalorder %s858_s7, %s853_s2 }
  0x3e   : > { %p856_p2 = pnand %p855_p0, %p854_p13  ;;  %p862_p8 = scmp.lt.u32.totalorder %s853_s2, %s1150_s4 }
  0x3f   : > { %p861_p7 = por %p860_p3, %p859_p1 }
  0x40   : > { %p857_p4 = pneg %p856_p2 }
  0x41   : > { %p863_p5 = por %p862_p8, %p861_p7 }
  0x43   : > { %p864_p11 = pnand %p863_p5, %p857_p4 }
  0x45   : > { %867 = shalt.err (!%p864_p11)
}
  0x46   : > { %s868_s14 = scalar_lea.vmem %s1152_s30, 128  ;;  %s1000_s29 = smov [#allocation6]  }
  0x47   : > { %p869_p13 = scmp.ne.s32.totalorder %s1152_s30, %s868_s14  ;;  %s873_s5 = sshll.u32 %s1000_s29, 4  ;;  %s874_s5 = int_to_ptr.vmem [resolvable:$false] %s873_s5 }
  0x48   : > { %s875_s24 = scalar_lea.vmem %s874_s5, 256  ;;  %p876_p10 = scmp.lt.s32.totalorder %s1152_s30, %s874_s5 }
  0x49   : > { %p871_p2 = pnand %p869_p13, %p855_p0  ;;  %p877_p1 = scmp.lt.s32.totalorder %s875_s24, %s868_s14 }
  0x4b   : > { %p872_p6 = pneg %p871_p2  ;;  %p878_p3 = por %p877_p1, %p876_p10 }
  0x4d   : > { %p879_p7 = pnand %p878_p3, %p872_p6 }
  0x4f   : > { %882 = shalt.err (!%p879_p7)
}
  0x50   : > { %725 = dma.hbm_to_vmem [thread:$0]  (!%p1158_p12), %s1150_s4, 128, %s1152_s30, %s224_s9  }
  0x51   : > { %s67_s2 = sand.u32 1, %s1140_s11   ;;  %s92_s12 = sadd.s32 1, %s971_s17 }
  0x52   : > { %p672_p6 = scmp.lt.s32.totalorder %s67_s2, 0  ;;  %s74_s8 = sadd.s32 2, %s67_s2 }
  0x53   : > { %p675_p10 = scmp.lt.s32.totalorder %s1144_s18, 0  ;;  %s87_s7 = sadd.s32 2, %s1144_s18 }
  0x54   : > { %s1353_s8 = smov (!%p672_p6, %s74_s8), %s67_s2  ;;  %p99_p11 = scmp.ne.s32.totalorder %s971_s17, %s967_s16 }
  0x55   : > { %s1355_s7 = smov (!%p675_p10, %s87_s7), %s1144_s18  ;;  %p105_p0 = scmp.ne.s32.totalorder %s967_s16, %s963_s15 }
  0x56   : > { %s89_s13 = ssub.s32 %s1353_s8, %s1355_s7  ;;  %s241_s27 = sand.u32 1, %s995_s23  }
  0x57   : > { %p90_p4 = scmp.eq.s32.totalorder %s89_s13, 0  ;;  %p1335_p8 = scmp.eq.s32.totalorder %s995_s23, 0 }
  0x58   : > { %p1201_p12 = por %p105_p0, %p1332_p9  ;;  %s243_s30 = sand.u32 1, %s971_s17  }
  0x59   : > { %p101_p5 = por %p99_p11, %p1335_p8  ;;  %s685_s9 = sshll.u32 %s1353_s8, 7 }
  0x5a   : > { %s1206_s11 = scalar_select %p90_p4, %s971_s17, %s92_s12  }
  0x5b   : > { %s681_s14 = sshll.u32 %s243_s30, 3  ;;  %s1212_s18 = scalar_lea.hbm %s1313_s1, %s685_s9 }
  0x5c   : > { %p1337_p13 = scmp.lt.s32.totalorder %s995_s23, 2  ;;  %s245_s24 = scalar_lea.vmem [#allocation8], %s681_s14 }
  0x5d   : > { %s265_s2 = sshll.u32 %s245_s24, 4  ;;  %s242_s12 = scalar_lea.sflag [#allocation9], %s241_s27  ;;  %s1220_s2 = int_to_ptr.vmem [resolvable:$true] %s265_s2 }
  0x5e   : > { %p1216_p2 = pnand %p1337_p13, %p101_p5  ;;  %s883_s8 = scalar_lea.hbm %s1212_s18, 128 }
  0x5f   : > { %p884_p9 = scmp.ne.s32.totalorder %s1212_s18, %s883_s8  ;;  %s888_s30 = scalar_lea.hbm %s1313_s1, 256 }
  0x60   : > { %p885_p1 = pneg %p1216_p2  ;;  %p889_p6 = scmp.lt.u32.totalorder %s1212_s18, %s1313_s1 }
  0x61   : > { %p890_p10 = scmp.lt.u32.totalorder %s888_s30, %s883_s8  ;;  %p892_p0 = scmp.lt.u32.totalorder %s883_s8, %s1212_s18 }
  0x62   : > { %p886_p3 = pnand %p885_p1, %p884_p9 }
  0x63   : > { %p891_p11 = por %p890_p10, %p889_p6 }
  0x64   : > { %p887_p7 = pneg %p886_p3 }
  0x65   : > { %p893_p4 = por %p892_p0, %p891_p11 }
  0x67   : > { %p894_p8 = pnand %p893_p4, %p887_p7 }
  0x69   : > { %897 = shalt.err (!%p894_p8)
}
  0x6a   : > { %s898_s27 = scalar_lea.vmem %s1220_s2, 128  ;;  %s1001_s14 = smov [#allocation8]  }
  0x6b   : > { %p899_p5 = scmp.ne.s32.totalorder %s1220_s2, %s898_s27  ;;  %s903_s5 = sshll.u32 %s1001_s14, 4  ;;  %s904_s5 = int_to_ptr.vmem [resolvable:$false] %s903_s5 }
  0x6c   : > { %s905_s24 = scalar_lea.vmem %s904_s5, 256  ;;  %p906_p3 = scmp.lt.s32.totalorder %s1220_s2, %s904_s5 }
  0x6d   : > { %p901_p13 = pnand %p899_p5, %p885_p1  ;;  %p907_p6 = scmp.lt.s32.totalorder %s905_s24, %s898_s27 }
  0x6f   : > { %p902_p9 = pneg %p901_p13  ;;  %p908_p10 = por %p907_p6, %p906_p3 }
  0x71   : > { %p909_p11 = pnand %p908_p10, %p902_p9 }
  0x73   : > { %912 = shalt.err (!%p909_p11)
}
  0x74   : > { %728 = dma.hbm_to_vmem [thread:$0]  (!%p1216_p2), %s1212_s18, 128, %s1220_s2, %s242_s12  }
  0x75   : > { %p1339_p7 = scmp.ne.s32.totalorder %s1328_s26, 0 }
  0x76   : > { %s276_s8 = sand.u32 (!%p1339_p7), 1, %s979_s19   ;;  %p1340_p1 = scmp.ne.s32.totalorder (!%p1339_p7), %s1333_s28, 0 }
  0x77   : > { %274 = sbr.rel (%p1339_p7) target bundleno = 765 (0x2fd), region = 32  ;;  %s687_s7 = sshll.u32 (!%p1339_p7), %s276_s8, 3 }
  0x78   : > { %s277_s13 = scalar_lea.sflag (!%p1339_p7), [#allocation7], %s276_s8  ;;  %s280_s30 = scalar_lea.vmem (!%p1339_p7), [#allocation6], %s687_s7 }
  0x7e   : > { %950 = dma.done.wait (%p1340_p1), %s277_s13, 128  }
  0x7f   : > { %952 = vsyncadd (%p1340_p1), %s277_s13, 4294967168  ;;  %s1341_s9 = sadd.s32 4294967295, %s995_s23   ;;  %s287_s18 = sand.u32 1, %s967_s16  }
  0x80   : > { %s285_s15 = sand.u32 1, %s1341_s9   ;;  %s688_s2 = sshll.u32 %s287_s18, 3 }
  0x81   : > { %s286_s26 = scalar_lea.sflag [#allocation9], %s285_s15  ;;  %s289_s12 = scalar_lea.vmem [#allocation8], %s688_s2 }
  0x82   : > { %954 = dma.done.wait (%p1201_p12), %s286_s26, 128  }
  0x83   : > { %956 = vsyncadd (%p1201_p12), %s286_s26, 4294967168  ;;  %p1342_p2 = scmp.ne.s32.totalorder %s1327_s25, 0 }
  0x85   : > { %958 = dma.done.wait (%p1342_p2), [#allocation9], 256  }
  0x86   : > { %960 = vsyncadd (%p1342_p2), [#allocation9], 4294967040  ;;  %v384_v0 = vld [vmem:[#allocation10] sm:$0xff]  ;;  %v385_v2 = vld [vmem:[#allocation10 + $0x8] sm:$0xff]  ;;  %v1002_v8 = vmov 0.0|0.0   ;;  %vm380_vm0 = vcmask 7168   ;;  %v489_v44 = vlaneseq }
  0x87   : > { %v352_v1 = vld [vmem:[%s280_s30] sm:$0xff]  ;;  %v386_v3 = vmul.f32 %v384_v0, %v384_v0  ;;  %v353_v5 = vld [vmem:[%s289_s12] sm:$0xff]  ;;  %v387_v6 = vmul.f32 %v385_v2, %v385_v2  ;;  %707 = vmatprep.subr.bf16.mxu0 %v1002_v8  ;;  %v1003_v9 = vmov 0.0   ;;  %vm1004_vm1 = vmmov 0   ;;  %s692_s25 = sshll.u32 %s987_s21, 3  ;;  %p340_p12 = scmp.lt.s32.totalorder %s987_s21, 1 }
  0x88   : > { %v354_v4 = vmul.f32 %v352_v1, %v352_v1  ;;  %v359_v7 = vmul.f32 %v353_v5, %v353_v5  ;;  %382 = vst.msk [vmem:[#allocation4] sm:$0xff] %vm380_vm0, %v1003_v9  ;;  %383 = vst.msk [vmem:[#allocation5] sm:$0xff] %vm380_vm0, %v1003_v9  ;;  %704 = vmatprep.mubr.msk.f32.mxu0 %vm1004_vm1, %v1003_v9  ;;  %v1005_v28 = vmov 0   ;;  %v490_v45 = vshrl.u32 %v489_v44, 7  ;;  %s1343_s24 = sld [smem:[#allocation15_spill]] }
  0x89   : > { %388 = vadd.xlane.f32.xlu0 %v386_v3  ;;  %811 = vset.pattern.permute.xlu1 %v1005_v28  ;;  %v491_v46 = vstv %s692_s25  ;;  %v495_v53 = vand.u32 127, %v489_v44  ;;  %vm507_vm10 = vcmask 130048   ;;  %s1357_s21 = smov (!%p340_p12, %s987_s21), 1 }
  0x8a   : > { %355 = vadd.xlane.f32.xlu1 %v354_v4  ;;  %812 = vset.pattern.permute.xlu0 %v1005_v28  ;;  %v492_v48 = vadd.s32 %v491_v46, %v490_v45  ;;  %s690_s28 = sshll.u32 %s1357_s21, 3 }
  0x8b   : > { %s343_s27 = scalar_lea.vmem %s1315_s3, %s690_s28 }
  0x8c   : > { %v499_v50 = vadd.s32 8, %v492_v48  ;;  %v693_v51 = vadd.s32 4294967288, %v492_v48  ;;  %vm498_vm4 = vcmp.lt.s32.totalorder %v492_v48, 8  ;;  %vm502_vm7 = vcmp.ne.s32.totalorder %v495_v53, %v492_v48 }
  0x8d   : > { %390 = vadd.xlane.f32.xlu0 %v387_v6 }
  0x8e   : > { %360 = vadd.xlane.f32.xlu1 %v359_v7  ;;  %v501_v55 = vsel %vm498_vm4, %v499_v50, %v693_v51  ;;  %s347_s8 = scalar_lea.vmem %s1343_s24, %s690_s28 }
  0x8f   : > { %vm503_vm8 = vcmp.ne.s32.totalorder %v495_v53, %v501_v55  ;;  %v514_v4 = vld [vmem:[#allocation5] sm:$0xff] }
  0x90   : > { %vm504_vm9 = vmand %vm502_vm7, %vm503_vm8 }
 0x116   : > { %v389_v10 = vpop.xlane.xlu0 %388 }
 0x117   : > { %v356_v11 = vpop.xlane.xlu1 %355  ;;  %v392_v12 = vmax.f32 %v389_v10, 1e-24 }
 0x118   : > { %v357_v13 = vmax.f32 %v356_v11, 1e-24 }
 0x119   : > { %813 = vrsqrt.f32 %v392_v12 }
 0x11a   : > { %v391_v14 = vpop.xlane.xlu0 %390  ;;  %815 = vrsqrt.f32 %v357_v13 }
 0x11b   : > { %v361_v15 = vpop.xlane.xlu1 %360  ;;  %v393_v16 = vmax.f32 %v391_v14, 1e-24 }
 0x11c   : > { %v362_v17 = vmax.f32 %v361_v15, 1e-24 }
 0x11d   : > { %817 = vrsqrt.f32 %v393_v16 }
 0x11e   : > { %819 = vrsqrt.f32 %v362_v17 }
 0x123   : > { %v814_v18 = vpop.eup %813 }
 0x124   : > { %v816_v19 = vpop.eup %815  ;;  %v396_v20 = vmul.f32 %v814_v18, %v384_v0 }
 0x125   : > { %v364_v24 = vmul.f32 %v816_v19, %v352_v1  ;;  %v506_v1 = vld [vmem:[#allocation4] sm:$0xff] }
 0x127   : > { %v818_v21 = vpop.eup %817 }
 0x128   : > { %v820_v22 = vpop.eup %819  ;;  %v397_v23 = vmul.f32 %v818_v21, %v385_v2 }
 0x129   : > { %v366_v25 = vmul.f32 %v820_v22, %v353_v5 }
 0x12a   : > { %v708_v26 = vpack.c.bf16 %v397_v23, %v396_v20 }
 0x12b   : > { %v367_v27 = vmul.f32 %v366_v25, %v364_v24 }
 0x12c   : > { %709 = vmatpush3.bf16.xpose.msra.mxu0 %v708_v26 }
 0x12d   : > { %368 = vadd.xlane.f32.xlu0 %v367_v27 }
 0x133   : > { %705 = vmatmul.mubr.f32.vlgmr.msra.gmra.mrb[0].mxu0 %v364_v24 }
 0x1ba   : > { %v369_v29 = vpop.xlane.xlu0 %368 }
 0x1bb   : > { %v370_v30 = vmul.f32 2.0, %v369_v29 }
 0x1bd   : > { %v371_v31 = vsub.f32 2.0, %v370_v30 }
 0x1bf   : > { %v372_v32 = vmax.f32 %v371_v31, 0.0 }
 0x1c1   : > { %821 = vrsqrt.f32 %v372_v32  ;;  %vm375_vm2 = vcmp.eq.f32.partialorder %v372_v32, inf  ;;  %v378_v35 = vand.u32 2147483648, %v372_v32  ;;  %vm377_vm3 = vcmp.eq.f32.partialorder %v372_v32, 0.0 }
 0x1cb   : > { %v822_v33 = vpop.eup %821 }
 0x1cc   : > { %v374_v34 = vmul.f32 %v822_v33, %v372_v32 }
 0x1ce   : > { %v376_v36 = vsel %vm375_vm2, %v372_v32, %v374_v34 }
 0x1cf   : > { %v379_v37 = vsel %vm377_vm3, %v378_v35, %v376_v36 }
 0x1d0   : > { %381 = vst.msk [vmem:[#allocation3] sm:$0xff] %vm380_vm0, %v379_v37 }
 0x1d7   : > { %v479_v38 = vld [vmem:[#allocation3] sm:$0xff] }
 0x1d8   : > { %482 = vperm.xlu1 %811, %v479_v38  }
 0x206   : > { %v465_v39 = vpop.f32.mrb[0].mxu0 }
 0x207   : > { %v706_v40 = vpop.f32.mrb[1].mxu0  ;;  %v469_v41 = vmul.f32 2.0, %v465_v39 }
 0x209   : > { %v470_v42 = vsub.f32 2.0, %v469_v41 }
 0x20b   : > { %v471_v43 = vmax.f32 %v470_v42, 0.0 }
 0x20d   : > { %823 = vrsqrt.f32 %v471_v43  ;;  %vm474_vm5 = vcmp.eq.f32.partialorder %v471_v43, inf  ;;  %v477_v54 = vand.u32 2147483648, %v471_v43  ;;  %vm476_vm6 = vcmp.eq.f32.partialorder %v471_v43, 0.0 }
 0x217   : > { %v824_v47 = vpop.eup %823 }
 0x218   : > { %v473_v49 = vmul.f32 %v824_v47, %v471_v43 }
 0x21a   : > { %v475_v52 = vsel %vm474_vm5, %v471_v43, %v473_v49 }
 0x21b   : > { %v478_v56 = vsel %vm476_vm6, %v477_v54, %v475_v52 }
 0x257   : > { %v483_v57 = vpop.permute.xlu1 %482 }
 0x258   : > { %v485_v58 = vsub.f32 %v483_v57, %v478_v56 }
 0x25a   : > { %v486_v59 = vadd.f32 0.05, %v485_v58 }
 0x25c   : > { %v487_v60 = vmax.f32 %v486_v59, 0.0 }
 0x25e   : > { %v505_v61 = vsel %vm504_vm9, %v487_v60, 0.0 }
 0x25f   : > { %v508_v62 = vsel %vm507_vm10, %v505_v61, 0.0  ;;  %vm515_vm11 = vcmp.gt.f32.partialorder %v505_v61, 0.0 }
 0x260   : > { %509 = vadd.xlane.f32.xlu0 %v508_v62  ;;  %v694_v63 = vsel %vm515_vm11, 1.0, %v1003_v9 }
 0x261   : > { %v518_v0 = vsel %vm507_vm10, %v694_v63, 0.0 }
 0x264   : > { %519 = vadd.xlane.f32.xlu0 %v518_v0 }
 0x2ed   : > { %v510_v2 = vpop.xlane.xlu0 %509 }
 0x2ee   : > { %v511_v3 = vadd.f32 %v510_v2, %v506_v1 }
 0x2f0   : > { %513 = vst.msk [vmem:[#allocation4] sm:$0xff] %vm380_vm0, %v511_v3 }
 0x2f1   : > { %v520_v5 = vpop.xlane.xlu0 %519 }
 0x2f2   : > { %v521_v6 = vadd.f32 %v520_v5, %v514_v4 }
 0x2f4   : > { %522 = vst.msk [vmem:[#allocation5] sm:$0xff] %vm380_vm0, %v521_v6 }
 0x2f7   : > { %v526_v7 = vld [vmem:[#allocation4] sm:$0xff] }
 0x2f8   : > { %527 = vst.msk [vmem:[%s343_s27] sm:$0xff] %vm380_vm0, %v526_v7 }
 0x2fb   : > { %v528_v8 = vld [vmem:[#allocation5] sm:$0xff] }
 0x2fc   : > { %529 = vst.msk [vmem:[%s347_s8] sm:$0xff] %vm380_vm0, %v528_v8 }
 0x2fd PF: > { %s21_s23 = sadd.s32 1, %s995_s23   ;;  %s1344_s15 = smov %s967_s16 }
 0x2fe   : > { %p18_p0 = scmp.ge.s32.totalorder %s21_s23, 4   ;;  %s1345_s16 = smov %s971_s17 }
 0x2ff   : > { %s1346_s17 = smov %s1206_s11  ;;  %s1347_s18 = smov %s979_s19 }
 0x300   : > { %s1348_s19 = smov %s983_s20  ;;  %s1349_s20 = smov %s1138_s10 }
 0x301   : > { %s1350_s21 = smov %s991_s22  ;;  %s1351_s22 = smov %s1118_s6 }
 0x302   :  { %20 = sbr.rel (!%p18_p0) target bundleno = 11 (0xb), region = 110 }
 0x309   :  { %563 = vsyncpa [#allocation7], 1 }
 0x30a   :  { %565 = vsyncpa [#allocation7 + $0x1], 1 }
 0x30b   :  { %566 = vsyncpa [#allocation9], 1 }
 0x30c   :  { %568 = vsyncpa [#allocation9 + $0x1], 1 }

</bundles_post_ra>
